<compile_context>
chip_gen: v7x
topology: tpu7x:2x2x1
jax: 0.10.0
libtpu: 0.0.40
codegen_flags: <defaults>
</compile_context>

<pallas_src>
import jax
import jax.numpy as jnp
from jax.experimental import pallas as pl
from jax.experimental.pallas import tpu as pltpu

LANE = 128  # TPU lane width; all layer widths are padded to this inside the kernel.


def _round_up(x, m):
    return -(-x // m) * m


# ---------------------------------------------------------------------------
# Parameter packing (done ONCE at build time): one (R, 128) f32 slab holding
# every weight and bias, zero-padded so every per-layer matmul runs at a full
# 128-lane width.
#   layer 0 weight rows = d_in padded to a multiple of 128 (matches padded x)
#   layer >0 weight rows = 128 (matches the lane-padded activation width)
#   each bias occupies one 8-row region (row 0 valid) for clean sublane offsets
# ---------------------------------------------------------------------------
def pack_params(params, d_in, lane=LANE):
    n_layers = len(params) // 2
    blocks, layout, row = [], [], 0
    in_width = _round_up(d_in, lane)  # activation width entering layer 0
    for li in range(n_layers):
        w = params[2 * li]
        b = params[2 * li + 1]
        fan_in, fan_out = w.shape
        assert fan_out <= lane, "layer widths must fit in one 128-lane tile"
        w_rows = in_width if li == 0 else lane
        w_pad = jnp.zeros((w_rows, lane), jnp.float32).at[:fan_in, :fan_out].set(
            w.astype(jnp.float32))
        b_pad = jnp.zeros((8, lane), jnp.float32).at[0, :fan_out].set(
            jnp.reshape(b, (-1,)).astype(jnp.float32))
        blocks += [w_pad, b_pad]
        layout.append((row, w_rows, row + w_rows))  # (w_off, w_rows, b_off)
        row += w_rows + 8
        in_width = lane
    return jnp.concatenate(blocks, axis=0), tuple(layout), row


# ---------------------------------------------------------------------------
# Fused kernel: all Linear layers + ReLU + masked Softmax on one row tile.
#   x_ref : (tm, d_in_pad)   current batch-row tile, bf16
#   p_ref : (p_rows, 128)    packed f32 weights/biases (resident, 1 DMA/call)
#   o_ref : (tm, 128)        lane-dense bf16 softmax output (cols >= n_out are 0)
# ---------------------------------------------------------------------------
def make_mlp_kernel(layout, n_out):
    last = len(layout) - 1

    def kernel(x_ref, p_ref, o_ref):
        h = x_ref[...]                                           # bf16 activations
        for li, (w_off, w_rows, b_off) in enumerate(layout):
            # bf16 weights -> native single-pass MXU; f32 accumulation.
            w = p_ref[w_off:w_off + w_rows, :].astype(jnp.bfloat16)
            b = p_ref[b_off:b_off + 1, :]                        # f32 bias row
            h = jnp.dot(h, w, preferred_element_type=jnp.float32) + b
            if li < last:
                h = jnp.maximum(h, 0.0).astype(jnp.bfloat16)     # hidden ReLU (bf16 for next dot)
        # Softmax over dim=1 in f32; mask the lane padding (cols >= n_out) to -inf.
        col = jax.lax.broadcasted_iota(jnp.int32, h.shape, 1)
        h = jnp.where(col < n_out, h, -jnp.inf)
        m = jnp.max(h, axis=-1, keepdims=True)
        e = jnp.exp(h - m)
        denom = jnp.sum(e, axis=-1, keepdims=True)
        inv = pl.reciprocal(denom, approx=False)                 # exact; EUP/VPU idle anyway
        o_ref[...] = (e * inv).astype(o_ref.dtype)               # lane-dense bf16 store

    return kernel


# ---------------------------------------------------------------------------
# Builder: packs parameters once and returns a jitted forward(x_nchw) closure
# equivalent to TorchMLP.forward (eval semantics, p_to_be_zeroed=0).
# ---------------------------------------------------------------------------
def build_torch_mlp_forward(params, d_in, *, tm_default=1024):
    # TODO(synk): nn.Dropout branch (p_to_be_zeroed > 0) not implemented; this
    # config inserts no Dropout layers so eval/forward semantics are identical.
    packed, layout, p_rows = pack_params(params, d_in)           # built ONCE
    n_out = params[-2].shape[1]
    d_in_pad = _round_up(d_in, LANE)
    kernel = make_mlp_kernel(layout, n_out)
    assert tm_default % 8 == 0

    @jax.jit
    def _fwd(x_nchw, packed_slab):
        B = x_nchw.shape[0]
        x = jnp.reshape(x_nchw, (B, -1)).astype(jnp.bfloat16)    # nn.Flatten + bf16 MXU operand
        if d_in_pad != d_in:                                     # no-op for d_in=256
            x = jnp.pad(x, ((0, 0), (0, d_in_pad - d_in)))

        # Row tile: one full-array block when B fits (no padding, no partial
        # blocks), otherwise tm_default-row tiles with a ragged (masked) last
        # block — no row-padded HBM copy of x in either case.
        tm = B if B <= tm_default else tm_default
        n_tiles = pl.cdiv(B, tm)

        out = pl.pallas_call(
            kernel,
            out_shape=jax.ShapeDtypeStruct((B, LANE), jnp.bfloat16),
            grid=(n_tiles,),
            in_specs=[
                pl.BlockSpec((tm, d_in_pad), lambda i: (i, 0)),   # x: tiled over rows
                pl.BlockSpec((p_rows, LANE), lambda i: (0, 0)),   # params: resident (1 DMA)
            ],
            out_specs=pl.BlockSpec((tm, LANE), lambda i: (i, 0)),  # lane-dense output slab
            compiler_params=pltpu.CompilerParams(
                dimension_semantics=("parallel",),                # megacore on v7x
            ),
        )(x, packed_slab)
        # Tiny epilogue: drop padded lanes, return f32 like the torch module.
        return out[:B, :n_out].astype(jnp.float32)

    return lambda x_nchw: _fwd(x_nchw, packed)


def init_params(key, size):
    """Deterministic init with PyTorch nn.Linear-style bounds (U[-1/sqrt(fan_in), +])."""
    params = []
    keys = jax.random.split(key, 2 * (len(size) - 1))
    for i in range(len(size) - 1):
        fan_in, fan_out = size[i], size[i + 1]
        bound = 1.0 / (fan_in ** 0.5)
        w = jax.random.uniform(keys[2 * i], (fan_in, fan_out),
                               minval=-bound, maxval=bound, dtype=jnp.float32)
        b = jax.random.uniform(keys[2 * i + 1], (1, fan_out),
                               minval=-bound, maxval=bound, dtype=jnp.float32)
        params.extend([w, b])
    return tuple(params)


def _reference(x_nchw, params):
    w1, b1, w2, b2, w3, b3 = params
    xf = x_nchw.reshape(x_nchw.shape[0], -1)
    r = jnp.maximum(xf @ w1 + b1, 0.0)
    r = jnp.maximum(r @ w2 + b2, 0.0)
    return jax.nn.softmax(r @ w3 + b3, axis=1)


if __name__ == "__main__":
    # size = [256, 32, 32, 10]  -> input images (B, 1, 16, 16) flatten to 256.
    size = [256, 32, 32, 10]
    key = jax.random.PRNGKey(0)
    k_x, k_p, k_x2 = jax.random.split(key, 3)
    params = init_params(k_p, size)

    forward = build_torch_mlp_forward(params, d_in=size[0])   # params packed once here

    # Tolerances: bf16 matmul operands + bf16 output store give ~1e-3..4e-3
    # end-to-end probability error vs the exact f32 reference; softmax
    # normalization itself uses the exact reciprocal.
    # Case 1: tiny batch (B=2), single full-array block.
    x_small = jax.random.normal(k_x, (2, 1, 16, 16), dtype=jnp.float32)
    out_small = jax.block_until_ready(forward(x_small))
    ref_small = _reference(x_small, params)
    assert out_small.shape == (2, 10)
    assert jnp.allclose(out_small, ref_small, atol=1e-2), "mismatch vs reference (B=2)"
    assert jnp.allclose(jnp.sum(out_small, axis=1), 1.0, atol=5e-3)

    # Case 2: batched path (B=300) — no row padding, single 300-row block.
    x_big = jax.random.normal(k_x2, (300, 1, 16, 16), dtype=jnp.float32)
    out_big = jax.block_until_ready(forward(x_big))
    ref_big = _reference(x_big, params)
    assert out_big.shape == (300, 10)
    assert jnp.allclose(out_big, ref_big, atol=1e-2), "mismatch vs reference (B=300)"
    assert jnp.allclose(jnp.sum(out_big, axis=1), 1.0, atol=5e-3)

    print("KERNEL_OK")
</pallas_src>

<mosaic_0001>
module attributes {stable_mosaic.version = 11 : i64} {
  func.func @kernel(%arg0: i32, %arg1: memref<2x256xbf16, #tpu.memory_space<vmem>>, %arg2: memref<536x128xf32, #tpu.memory_space<vmem>>, %arg3: memref<2x128xbf16, #tpu.memory_space<vmem>>) attributes {dimension_semantics = [#tpu.dimension_semantics<parallel>], iteration_bounds = array<i64: 1>, scalar_prefetch = 0 : i64, scratch_operands = 0 : i64, tpu.core_type = #tpu.core_type<tc>, window_params = [{transform_indices = @transform_0, window_bounds = array<i64: 2, 256>}, {pipeline_mode = #tpu.pipeline_mode<synchronous>, transform_indices = @transform_1, window_bounds = array<i64: 536, 128>}, {transform_indices = @transform_2, window_bounds = array<i64: 2, 128>}]} {
    %c0 = arith.constant 0 : index
    %c0_0 = arith.constant 0 : index
    %0 = vector.load %arg1[%c0, %c0_0] : memref<2x256xbf16, #tpu.memory_space<vmem>>, vector<2x256xbf16>
    %c0_1 = arith.constant 0 : index
    %c0_2 = arith.constant 0 : index
    %1 = vector.load %arg2[%c0_1, %c0_2] : memref<536x128xf32, #tpu.memory_space<vmem>>, vector<256x128xf32>
    %2 = arith.truncf %1 : vector<256x128xf32> to vector<256x128xbf16>
    %c256 = arith.constant 256 : index
    %c0_3 = arith.constant 0 : index
    %3 = vector.load %arg2[%c256, %c0_3] : memref<536x128xf32, #tpu.memory_space<vmem>>, vector<1x128xf32>
    %cst = arith.constant dense<0.000000e+00> : vector<2x128xf32>
    %4 = tpu.matmul %0, %2, %cst {dimension_numbers = #tpu.dot_dimension_numbers<[1], [0], [0], [1], [0, 0, 1, 1], [], []>} : vector<2x256xbf16>, vector<256x128xbf16>, vector<2x128xf32> -> vector<2x128xf32>
    %5 = vector.broadcast %3 : vector<1x128xf32> to vector<2x128xf32>
    %6 = arith.addf %4, %5 : vector<2x128xf32>
    %cst_4 = arith.constant 0.000000e+00 : f32
    %7 = vector.broadcast %cst_4 : f32 to vector<2x128xf32>
    %8 = arith.maximumf %6, %7 : vector<2x128xf32>
    %9 = arith.truncf %8 : vector<2x128xf32> to vector<2x128xbf16>
    %c264 = arith.constant 264 : index
    %c0_5 = arith.constant 0 : index
    %10 = vector.load %arg2[%c264, %c0_5] : memref<536x128xf32, #tpu.memory_space<vmem>>, vector<128x128xf32>
    %11 = arith.truncf %10 : vector<128x128xf32> to vector<128x128xbf16>
    %c392 = arith.constant 392 : index
    %c0_6 = arith.constant 0 : index
    %12 = vector.load %arg2[%c392, %c0_6] : memref<536x128xf32, #tpu.memory_space<vmem>>, vector<1x128xf32>
    %cst_7 = arith.constant dense<0.000000e+00> : vector<2x128xf32>
    %13 = tpu.matmul %9, %11, %cst_7 {dimension_numbers = #tpu.dot_dimension_numbers<[1], [0], [0], [1], [0, 0, 1, 1], [], []>} : vector<2x128xbf16>, vector<128x128xbf16>, vector<2x128xf32> -> vector<2x128xf32>
    %14 = vector.broadcast %12 : vector<1x128xf32> to vector<2x128xf32>
    %15 = arith.addf %13, %14 : vector<2x128xf32>
    %cst_8 = arith.constant 0.000000e+00 : f32
    %16 = vector.broadcast %cst_8 : f32 to vector<2x128xf32>
    %17 = arith.maximumf %15, %16 : vector<2x128xf32>
    %18 = arith.truncf %17 : vector<2x128xf32> to vector<2x128xbf16>
    %c400 = arith.constant 400 : index
    %c0_9 = arith.constant 0 : index
    %19 = vector.load %arg2[%c400, %c0_9] : memref<536x128xf32, #tpu.memory_space<vmem>>, vector<128x128xf32>
    %20 = arith.truncf %19 : vector<128x128xf32> to vector<128x128xbf16>
    %c528 = arith.constant 528 : index
    %c0_10 = arith.constant 0 : index
    %21 = vector.load %arg2[%c528, %c0_10] : memref<536x128xf32, #tpu.memory_space<vmem>>, vector<1x128xf32>
    %cst_11 = arith.constant dense<0.000000e+00> : vector<2x128xf32>
    %22 = tpu.matmul %18, %20, %cst_11 {dimension_numbers = #tpu.dot_dimension_numbers<[1], [0], [0], [1], [0, 0, 1, 1], [], []>} : vector<2x128xbf16>, vector<128x128xbf16>, vector<2x128xf32> -> vector<2x128xf32>
    %23 = vector.broadcast %21 : vector<1x128xf32> to vector<2x128xf32>
    %24 = arith.addf %22, %23 : vector<2x128xf32>
    %25 = tpu.iota {dimensions = array<i32: 1>} : vector<2x128xi32>
    %c10_i32 = arith.constant 10 : i32
    %26 = vector.broadcast %c10_i32 : i32 to vector<2x128xi32>
    %27 = arith.cmpi slt, %25, %26 : vector<2x128xi32>
    %cst_12 = arith.constant 0xFF800000 : f32
    %28 = vector.broadcast %cst_12 : f32 to vector<2x128xf32>
    %29 = arith.select %27, %24, %28 : vector<2x128xi1>, vector<2x128xf32>
    %cst_13 = arith.constant dense<0xFF800000> : vector<2xf32>
    %30 = vector.multi_reduction <maximumf>, %29, %cst_13 [1] : vector<2x128xf32> to vector<2xf32>
    %31 = vector.shape_cast %30 : vector<2xf32> to vector<2x1xf32>
    %32 = vector.broadcast %31 : vector<2x1xf32> to vector<2x128xf32>
    %33 = arith.subf %29, %32 : vector<2x128xf32>
    %34 = math.exp %33 : vector<2x128xf32>
    %cst_14 = arith.constant dense<0.000000e+00> : vector<2xf32>
    %35 = vector.multi_reduction <add>, %34, %cst_14 [1] : vector<2x128xf32> to vector<2xf32>
    %36 = vector.shape_cast %35 : vector<2xf32> to vector<2x1xf32>
    %37 = tpu.reciprocal %36 : vector<2x1xf32> -> vector<2x1xf32>
    %38 = vector.broadcast %37 : vector<2x1xf32> to vector<2x128xf32>
    %39 = arith.mulf %34, %38 : vector<2x128xf32>
    %40 = arith.truncf %39 : vector<2x128xf32> to vector<2x128xbf16>
    %c0_15 = arith.constant 0 : index
    %c0_16 = arith.constant 0 : index
    %41 = vector.load %arg3[%c0_15, %c0_16] : memref<2x128xbf16, #tpu.memory_space<vmem>>, vector<2x128xbf16>
    tpu.vector_store %arg3[%c0_15, %c0_16], %40 {strides = array<i32>} : memref<2x128xbf16, #tpu.memory_space<vmem>>, vector<2x128xbf16>,
    return
  }
  func.func @transform_0(%arg0: i32) -> (i32, i32) {
    %c0_i32 = arith.constant 0 : i32
    %c0_i32_0 = arith.constant 0 : i32
    return %arg0, %c0_i32 : i32, i32
  }
  func.func @transform_1(%arg0: i32) -> (i32, i32) {
    %c0_i32 = arith.constant 0 : i32
    %c0_i32_0 = arith.constant 0 : i32
    %c0_i32_1 = arith.constant 0 : i32
    return %c0_i32, %c0_i32_0 : i32, i32
  }
  func.func @transform_2(%arg0: i32) -> (i32, i32) {
    %c0_i32 = arith.constant 0 : i32
    %c0_i32_0 = arith.constant 0 : i32
    return %arg0, %c0_i32 : i32, i32
  }
}

</mosaic_0001>

<bundles_post_ra>
// kernel: _fwd.1
= control target key start
LH: loop header
LB: loop body
LE: loop exit
PB: predicated region body
PF: predicated region fallthrough
CT: control target
= control target key end

     0   :  { %7 = vsyncpa [#allocation3], 0  ;;  %s428_s9 = smov [#allocation2]   ;;  %s496_s0 = inlined_call_operand.vmem [shape: bf16[2,256], index: 0, kind: input, shape index: {}]   ;;  %s497_s1 = inlined_call_operand.hbm [shape: f32[536,128], index: 1, kind: input, shape index: {}]   ;;  %s498_s2 = inlined_call_operand.vmem [shape: bf16[2,128], index: 2, kind: output, shape index: {}]  }
   0x1   :  { %s15_s10 = sshll.u32 %s428_s9, 4  ;;  %s404_s13 = scalar_lea.hbm %s497_s1, 8576  ;;  %s16_s10 = int_to_ptr.vmem [resolvable:$true] %s15_s10 }
   0x2   :  { %p405_p0 = scmp.ne.s32.totalorder %s497_s1, %s404_s13  ;;  %p408_p1 = scmp.lt.u32.totalorder %s404_s13, %s497_s1 }
   0x4   :  { %p410_p2 = pnand %p408_p1, %p405_p0 }
   0x6   :  { %413 = shalt.err (!%p410_p2)
}
   0x7   :  { %s414_s18 = scalar_lea.vmem %s16_s10, 8576  ;;  %p419_p4 = scmp.lt.s32.totalorder %s16_s10, %s16_s10 }
   0x8   :  { %p415_p3 = scmp.ne.s32.totalorder %s16_s10, %s414_s18  ;;  %p420_p5 = scmp.lt.s32.totalorder %s414_s18, %s414_s18 }
   0xa   :  { %p421_p6 = por %p420_p5, %p419_p4 }
   0xc   :  { %p422_p7 = pnand %p421_p6, %p415_p3 }
   0xe   :  { %425 = shalt.err (!%p422_p7)
}
   0xf   :  { %s429_s19 = smov 128   ;;  %s430_s20 = smov 8  }
  0x10   :  { %21 = dma.hbm_to_vmem [thread:$0]  %s497_s1, 8576, %s16_s10, [#allocation3], %s429_s19, %s429_s19, %s430_s20  }
  0x11   :  { %426 = dma.done.wait [#allocation3], 8576  }
  0x12   :  { %427 = vsyncadd [#allocation3], 4294958720  ;;  %v431_v0 = vmov 0.0   ;;  %v43_v1 = vld [vmem:[#allocation2 + $0x80] sm:$0xff]  ;;  %v44_v2 = vld [vmem:[#allocation2 + $0x88] sm:$0xff]  ;;  %v92_v10 = vlaneseq  ;;  %vm433_vm0 = vmmov 0  }
  0x13   :  { %354 = vmatprep.subr.bf16.mxu1 %v431_v0  ;;  %v27_v3 = vld [vmem:[#allocation2] sm:$0xff]  ;;  %v67_v4 = vpack.c.bf16 %v44_v2, %v43_v1  ;;  %v28_v5 = vld [vmem:[#allocation2 + $0x8] sm:$0xff]  ;;  %v45_v6 = vld [vmem:[#allocation2 + $0x90] sm:$0xff]  ;;  %v432_v8 = vmov 1966171168   ;;  %370 = vmatprep.mubr.msk.bf16.mxu1 %vm433_vm0, %v431_v0  ;;  %vm291_vm2 = vcmask 1041408  }
  0x14   :  { %v46_v7 = vld [vmem:[#allocation2 + $0x98] sm:$0xff]  ;;  %v90_v9 = vunpack.c.l.s4 %v432_v8  ;;  %v59_v11 = vpack.c.bf16 %v28_v5, %v27_v3  ;;  %v29_v13 = vld [vmem:[#allocation2 + $0x10] sm:$0xff]  ;;  %v47_v15 = vld [vmem:[#allocation2 + $0xa0] sm:$0xff]  ;;  %v93_v22 = vshrl.u32 %v92_v10, 7 }
  0x15   :  { %v68_v12 = vpack.c.bf16 %v46_v7, %v45_v6  ;;  %v30_v14 = vld [vmem:[#allocation2 + $0x18] sm:$0xff]  ;;  %314 = vmatprep.subr.bf16.mxu0 %v67_v4  ;;  %v48_v16 = vld [vmem:[#allocation2 + $0xa8] sm:$0xff]  ;;  %v31_v19 = vld [vmem:[#allocation2 + $0x20] sm:$0xff] }
  0x16   :  { %315 = vmatpush3.bf16.msra.mxu0 %v59_v11  ;;  %v60_v17 = vpack.c.bf16 %v30_v14, %v29_v13  ;;  %v69_v18 = vpack.c.bf16 %v48_v16, %v47_v15  ;;  %v32_v20 = vld [vmem:[#allocation2 + $0x28] sm:$0xff]  ;;  %v91_v21 = vunpack.c.0.s8 %v90_v9  ;;  %v49_v23 = vld [vmem:[#allocation2 + $0xb0] sm:$0xff]  ;;  %v50_v24 = vld [vmem:[#allocation2 + $0xb8] sm:$0xff] }
  0x17   :  { %316 = vmatprep.subr.bf16.mxu0 %v68_v12  ;;  %v61_v25 = vpack.c.bf16 %v32_v20, %v31_v19  ;;  %v70_v26 = vpack.c.bf16 %v50_v24, %v49_v23  ;;  %v33_v27 = vld [vmem:[#allocation2 + $0x30] sm:$0xff]  ;;  %v34_v28 = vld [vmem:[#allocation2 + $0x38] sm:$0xff]  ;;  %v51_v30 = vld [vmem:[#allocation2 + $0xc0] sm:$0xff] }
  0x18   :  { %v463_v29 = vsub.s32 %v91_v21, %v93_v22  ;;  %v52_v31 = vld [vmem:[#allocation2 + $0xc8] sm:$0xff]  ;;  %v468_v32 = vld.sshfl [vmem:[%s496_s0] sm:$0x11 pattern:$0x75316420]  ;;  %v148_v35 = vld [vmem:[#allocation2 + $0x110] sm:$0xff]  ;;  %v62_v37 = vpack.c.bf16 %v34_v28, %v33_v27 }
  0x19   :  { %v88_v33 = vcombine.high %v468_v32, %v468_v32  ;;  %v147_v34 = vld [vmem:[#allocation2 + $0x108] sm:$0xff]  ;;  %v149_v36 = vld [vmem:[#allocation2 + $0x118] sm:$0xff]  ;;  %v150_v39 = vld [vmem:[#allocation2 + $0x120] sm:$0xff]  ;;  %v71_v40 = vpack.c.bf16 %v52_v31, %v51_v30 }
  0x1a   :  { %317 = vmatpush3.bf16.msra.mxu0 %v60_v17  ;;  %v163_v38 = vpack.c.bf16 %v148_v35, %v147_v34  ;;  %v35_v41 = vld [vmem:[#allocation2 + $0x40] sm:$0xff]  ;;  %v36_v42 = vld [vmem:[#allocation2 + $0x48] sm:$0xff]  ;;  %v53_v44 = vld [vmem:[#allocation2 + $0xd0] sm:$0xff]  ;;  %v164_v46 = vpack.c.bf16 %v150_v39, %v149_v36  ;;  %v95_v14 = vrot.slane %v468_v32, %v463_v29 }
  0x1b   :  { %318 = vmatprep.subr.bf16.mxu0 %v69_v18  ;;  %v102_v43 = vrot.slane %v88_v33, %v463_v29  ;;  %v54_v45 = vld [vmem:[#allocation2 + $0xd8] sm:$0xff]  ;;  %v151_v47 = vld [vmem:[#allocation2 + $0x128] sm:$0xff]  ;;  %v152_v48 = vld [vmem:[#allocation2 + $0x130] sm:$0xff]  ;;  %v63_v49 = vpack.c.bf16 %v36_v42, %v35_v41 }
  0x1c   :  { %355 = vmatpush3.bf16.msra.mxu1 %v163_v38  ;;  %v72_v50 = vpack.c.bf16 %v54_v45, %v53_v44  ;;  %v37_v51 = vld [vmem:[#allocation2 + $0x50] sm:$0xff]  ;;  %v38_v52 = vld [vmem:[#allocation2 + $0x58] sm:$0xff]  ;;  %v55_v53 = vld [vmem:[#allocation2 + $0xe0] sm:$0xff]  ;;  %v165_v55 = vpack.c.bf16 %v152_v48, %v151_v47 }
  0x1d   :  { %137 = vmatprep.mubr.bf16.mxu0 %v102_v43  ;;  %356 = vmatprep.subr.bf16.mxu1 %v431_v0  ;;  %v56_v54 = vld [vmem:[#allocation2 + $0xe8] sm:$0xff]  ;;  %v153_v56 = vld [vmem:[#allocation2 + $0x138] sm:$0xff]  ;;  %v154_v57 = vld [vmem:[#allocation2 + $0x140] sm:$0xff]  ;;  %v64_v58 = vpack.c.bf16 %v38_v52, %v37_v51 }
  0x1e   :  { %319 = vmatpush3.bf16.msra.mxu0 %v61_v25  ;;  %v73_v59 = vpack.c.bf16 %v56_v54, %v55_v53  ;;  %v39_v60 = vld [vmem:[#allocation2 + $0x60] sm:$0xff]  ;;  %v40_v61 = vld [vmem:[#allocation2 + $0x68] sm:$0xff]  ;;  %v57_v62 = vld [vmem:[#allocation2 + $0xf0] sm:$0xff]  ;;  %v166_v1 = vpack.c.bf16 %v154_v57, %v153_v56 }
  0x1f   :  { %320 = vmatprep.subr.bf16.mxu0 %v70_v26  ;;  %v58_v63 = vld [vmem:[#allocation2 + $0xf8] sm:$0xff]  ;;  %v155_v2 = vld [vmem:[#allocation2 + $0x148] sm:$0xff]  ;;  %v156_v3 = vld [vmem:[#allocation2 + $0x150] sm:$0xff]  ;;  %v65_v4 = vpack.c.bf16 %v40_v61, %v39_v60 }
  0x20   :  { %357 = vmatpush3.bf16.msra.mxu1 %v164_v46  ;;  %v74_v5 = vpack.c.bf16 %v58_v63, %v57_v62  ;;  %v41_v6 = vld [vmem:[#allocation2 + $0x70] sm:$0xff]  ;;  %v42_v7 = vld [vmem:[#allocation2 + $0x78] sm:$0xff]  ;;  %v167_v8 = vpack.c.bf16 %v156_v3, %v155_v2  ;;  %v158_v11 = vld [vmem:[#allocation2 + $0x160] sm:$0xff]  ;;  %v288_v62 = vand.u32 127, %v92_v10 }
  0x21   :  { %358 = vmatprep.subr.bf16.mxu1 %v431_v0  ;;  %v157_v9 = vld [vmem:[#allocation2 + $0x158] sm:$0xff]  ;;  %v66_v12 = vpack.c.bf16 %v42_v7, %v41_v6  ;;  %v159_v15 = vld [vmem:[#allocation2 + $0x168] sm:$0xff]  ;;  %v160_v16 = vld [vmem:[#allocation2 + $0x170] sm:$0xff] }
  0x22   :  { %321 = vmatpush3.bf16.msra.mxu0 %v62_v37  ;;  %v168_v13 = vpack.c.bf16 %v158_v11, %v157_v9  ;;  %v169_v17 = vpack.c.bf16 %v160_v16, %v159_v15  ;;  %v161_v18 = vld [vmem:[#allocation2 + $0x178] sm:$0xff]  ;;  %v162_v19 = vld [vmem:[#allocation2 + $0x180] sm:$0xff]  ;;  %v218_v21 = vld [vmem:[#allocation2 + $0x190] sm:$0xff]  ;;  %vm289_vm1 = vcmp.lt.s32.totalorder %v288_v62, 10 }
  0x23   :  { %322 = vmatprep.subr.bf16.mxu0 %v71_v40  ;;  %v170_v20 = vpack.c.bf16 %v162_v19, %v161_v18  ;;  %v219_v22 = vld [vmem:[#allocation2 + $0x198] sm:$0xff]  ;;  %v220_v23 = vld [vmem:[#allocation2 + $0x1a0] sm:$0xff]  ;;  %v221_v25 = vld [vmem:[#allocation2 + $0x1a8] sm:$0xff] }
  0x24   :  { %359 = vmatpush3.bf16.msra.mxu1 %v165_v55  ;;  %v234_v24 = vpack.c.bf16 %v219_v22, %v218_v21  ;;  %v235_v26 = vpack.c.bf16 %v221_v25, %v220_v23  ;;  %v222_v27 = vld [vmem:[#allocation2 + $0x1b0] sm:$0xff]  ;;  %v223_v28 = vld [vmem:[#allocation2 + $0x1b8] sm:$0xff]  ;;  %v224_v30 = vld [vmem:[#allocation2 + $0x1c0] sm:$0xff] }
  0x25   :  { %360 = vmatprep.subr.bf16.mxu1 %v431_v0  ;;  %v236_v29 = vpack.c.bf16 %v223_v28, %v222_v27  ;;  %v225_v31 = vld [vmem:[#allocation2 + $0x1c8] sm:$0xff]  ;;  %v226_v33 = vld [vmem:[#allocation2 + $0x1d0] sm:$0xff]  ;;  %v227_v34 = vld [vmem:[#allocation2 + $0x1d8] sm:$0xff] }
  0x26   :  { %323 = vmatpush3.bf16.msra.mxu0 %v63_v49  ;;  %v237_v32 = vpack.c.bf16 %v225_v31, %v224_v30  ;;  %v238_v35 = vpack.c.bf16 %v227_v34, %v226_v33  ;;  %v228_v36 = vld [vmem:[#allocation2 + $0x1e0] sm:$0xff]  ;;  %v229_v37 = vld [vmem:[#allocation2 + $0x1e8] sm:$0xff]  ;;  %v230_v48 = vld [vmem:[#allocation2 + $0x1f0] sm:$0xff] }
  0x27   :  { %324 = vmatprep.subr.bf16.mxu0 %v72_v50  ;;  %v239_v38 = vpack.c.bf16 %v229_v37, %v228_v36  ;;  %v310_v40 = vld [vmem:[#allocation2 + $0x100] ss:$0 sm:$0xff]  ;;  %v231_v49 = vld [vmem:[#allocation2 + $0x1f8] sm:$0xff]  ;;  %v233_v52 = vld [vmem:[#allocation2 + $0x208] sm:$0xff] }
  0x28   :  { %361 = vmatpush3.bf16.msra.mxu1 %v166_v1  ;;  %v240_v50 = vpack.c.bf16 %v231_v49, %v230_v48  ;;  %v232_v51 = vld [vmem:[#allocation2 + $0x200] sm:$0xff]  ;;  %v312_v54 = vld [vmem:[#allocation2 + $0x188] ss:$0 sm:$0xff]  ;;  %v313_v63 = vld [vmem:[#allocation2 + $0x210] ss:$0 sm:$0xff] }
  0x29   :  { %362 = vmatprep.subr.bf16.mxu1 %v431_v0  ;;  %v241_v53 = vpack.c.bf16 %v233_v52, %v232_v51 }
  0x2a   :  { %325 = vmatpush3.bf16.msra.mxu0 %v64_v58 }
  0x2b   :  { %326 = vmatprep.subr.bf16.mxu0 %v73_v59 }
  0x2c   :  { %363 = vmatpush3.bf16.msra.mxu1 %v167_v8 }
  0x2d   :  { %364 = vmatprep.subr.bf16.mxu1 %v431_v0 }
  0x2e   :  { %327 = vmatpush3.bf16.msra.mxu0 %v65_v4 }
  0x2f   :  { %328 = vmatprep.subr.bf16.mxu0 %v74_v5 }
  0x30   :  { %365 = vmatpush3.bf16.msra.mxu1 %v168_v13 }
  0x31   :  { %366 = vmatprep.subr.bf16.mxu1 %v431_v0 }
  0x32   :  { %329 = vmatpush3.bf16.msra.mxu0 %v66_v12 }
  0x33   :  { %374 = vmatprep.subr.bf16.mxu0 %v431_v0 }
  0x34   :  { %367 = vmatpush3.bf16.msra.mxu1 %v169_v17 }
  0x35   :  { %138 = vmatmul.mubr.bf16.vlgmr.msra.gmra.mrb[0].mxu0 %v95_v14  ;;  %368 = vmatprep.subr.bf16.mxu1 %v431_v0 }
  0x36   :  { %390 = vmatprep.mubr.msk.bf16.mxu0 %vm433_vm0, %v431_v0  ;;  %375 = vmatpush3.bf16.msra.mxu0 %v234_v24 }
  0x37   :  { %376 = vmatprep.subr.bf16.mxu0 %v431_v0 }
  0x38   :  { %369 = vmatpush3.bf16.msra.mxu1 %v170_v20 }
  0x3a   :  { %377 = vmatpush3.bf16.msra.mxu0 %v235_v26 }
  0x3b   :  { %378 = vmatprep.subr.bf16.mxu0 %v431_v0 }
  0x3e   :  { %379 = vmatpush3.bf16.msra.mxu0 %v236_v29 }
  0x3f   :  { %380 = vmatprep.subr.bf16.mxu0 %v431_v0 }
  0x42   :  { %381 = vmatpush3.bf16.msra.mxu0 %v237_v32 }
  0x43   :  { %382 = vmatprep.subr.bf16.mxu0 %v431_v0 }
  0x46   :  { %383 = vmatpush3.bf16.msra.mxu0 %v238_v35 }
  0x47   :  { %384 = vmatprep.subr.bf16.mxu0 %v431_v0 }
  0x4a   :  { %385 = vmatpush3.bf16.msra.mxu0 %v239_v38 }
  0x4b   :  { %386 = vmatprep.subr.bf16.mxu0 %v431_v0 }
  0x4e   :  { %387 = vmatpush3.bf16.msra.mxu0 %v240_v50 }
  0x4f   :  { %388 = vmatprep.subr.bf16.mxu0 %v431_v0 }
  0x52   :  { %389 = vmatpush3.bf16.msra.mxu0 %v241_v53 }
 0x108   :  { %v330_v39 = vpop.f32.mrb[0].mxu0 }
 0x109   :  { %v331_v41 = vpop.f32.mrb[1].mxu0 }
 0x10a   :  { %v332_v42 = vadd.f32 %v331_v41, %v330_v39  ;;  %v333_v43 = vpop.f32.mrb[2].mxu0 }
 0x10b   :  { %v334_v44 = vpop.f32.mrb[3].mxu0 }
 0x10c   :  { %v140_v45 = vadd.f32 %v332_v42, %v310_v40 }
 0x10e   :  { %v145_v46 = vmax.f32 %v140_v45, 0.0 }
 0x110   :  { %v146_v47 = vpack.c.bf16 %v145_v46, %v145_v46 }
 0x112   :  { %371 = vmatmul.mubr.bf16.vlgmr.msra.gmra.mrb[0].mxu1 %v146_v47 }
 0x1e5   :  { %v210_v55 = vpop.f32.mrb[0].mxu1 }
 0x1e6   :  { %v211_v56 = vadd.f32 %v312_v54, %v210_v55  ;;  %v372_v57 = vpop.f32.mrb[1].mxu1 }
 0x1e7   :  { %v213_v58 = vpop.f32.mrb[2].mxu1 }
 0x1e8   :  { %v216_v59 = vmax.f32 %v211_v56, 0.0  ;;  %v373_v60 = vpop.f32.mrb[3].mxu1 }
 0x1ea   :  { %v217_v61 = vpack.c.bf16 %v216_v59, %v216_v59 }
 0x1ec   :  { %391 = vmatmul.mubr.bf16.vlgmr.msra.gmra.mrb[4].mxu0 %v217_v61 }
 0x2bf   :  { %v281_v1 = vpop.f32.mrb[4].mxu0 }
 0x2c0   :  { %v282_v2 = vadd.f32 %v313_v63, %v281_v1  ;;  %v392_v0 = vpop.f32.mrb[5].mxu0 }
 0x2c1   :  { %v284_v3 = vpop.f32.mrb[6].mxu0 }
 0x2c2   :  { %v393_v4 = vpop.f32.mrb[7].mxu0  ;;  %v290_v5 = vsel %vm289_vm1, %v282_v2, -inf }
 0x2c3   :  { %v292_v6 = vsel %vm291_vm2, %v290_v5, -inf }
 0x2c4   :  { %293 = vmax.xlane.f32.xlu0 %v292_v6 }
 0x351   :  { %v294_v7 = vpop.xlane.xlu0 %293 }
 0x352   :  { %v295_v8 = vsub.f32 %v290_v5, %v294_v7 }
 0x354   :  { %v296_v9 = vmul.f32 1.442695, %v295_v8 }
 0x356   :  { %400 = vpow2.f32 %v296_v9 }
 0x360   :  { %v401_v11 = vpop.eup %400 }
 0x361   :  { %v298_v12 = vsel %vm291_vm2, %v401_v11, 0.0 }
 0x362   :  { %299 = vadd.xlane.f32.xlu0 %v298_v12 }
 0x3ef   :  { %v300_v13 = vpop.xlane.xlu0 %299 }
 0x3f0   :  { %402 = vrcp.f32 %v300_v13 }
 0x3fa   :  { %v403_v10 = vpop.eup %402 }
 0x3fb   :  { %v302_v14 = vmul.f32 %v403_v10, %v401_v11 }
 0x3fd   :  { %v303_v15 = vpack.c.bf16 %v302_v14, %v302_v14 }
 0x3ff   :  { %304 = vst [vmem:[%s498_s2] sm:$0x1] %v303_v15 }
 0x400   :  { %309 = vsyncpa [#allocation3], 1 }

</bundles_post_ra>
